<compile_context>
chip_gen: v7x
topology: tpu7x:2x2x1
jax: 0.10.0
libtpu: 0.0.40
codegen_flags: <defaults>
</compile_context>

<pallas_src>
import math

import jax
import jax.numpy as jnp
from jax import lax
from jax.experimental import pallas as pl
from jax.experimental.pallas import tpu as pltpu

_MIB = 1024 * 1024


def _round_up(x, m):
    return (x + m - 1) // m * m


def _round_down(x, m):
    return x // m * m


# ----------------------------------------------------------------------------
# Kernel
# ----------------------------------------------------------------------------
def _discriminator_kernel(wc_ref, b_ref, hpl_ref, hmi_ref, out_ref):
    """One grid step: scores for one (tile_n, n_h) slice of h_pl / h_mi.

    wc_ref : (1, n_h)      resident VMEM  -- W @ c, precomputed in the wrapper
    b_ref  : (1,)          SMEM scalar    -- bilinear bias
    hpl/hmi: (tile_n, n_h) streamed VMEM  -- auto double-buffered by BlockSpec
    out_ref: (2, tile_n)   lane-dense     -- row 0 = sc_1, row 1 = sc_2
    """
    b = b_ref[0]
    wc = wc_ref[...].astype(hpl_ref.dtype)   # tiny; match streamed dtype (bf16 ok)

    # Contract both operands on their last dim (transpose-RHS matmul, handled
    # natively by the MXU feed -> no full-tile XLU transpose of the h tile).
    # Result is already lane-dense: tile_n sits on the 128-lane axis.
    trans_rhs = (((1,), (1,)), ((), ()))
    sc1 = lax.dot_general(wc, hpl_ref[...], trans_rhs,
                          preferred_element_type=jnp.float32)   # (1, tile_n)
    sc2 = lax.dot_general(wc, hmi_ref[...], trans_rhs,
                          preferred_element_type=jnp.float32)   # (1, tile_n)

    # Two direct row stores: no concatenate copy in VMEM / vregs.
    out_ref[0:1, :] = (sc1 + b).astype(out_ref.dtype)
    out_ref[1:2, :] = (sc2 + b).astype(out_ref.dtype)


# ----------------------------------------------------------------------------
# Tiling / VMEM sizing
# ----------------------------------------------------------------------------
def _vmem_limit_bytes():
    """Scoped-VMEM limit safe for this kernel on all generations:
    ~48 MiB on v7x (64 MiB physical per TC), 64 MiB on v5e/v6e (128 MiB)."""
    try:
        phys = pltpu.get_tpu_info().vmem_capacity_bytes
    except Exception:
        phys = 64 * _MIB          # conservative fallback = v7x per-TC VMEM
    return min(_round_down(int(phys * 3) // 4, _MIB), 64 * _MIB)


def _derive_tile_n(N, n_h, itemsize, vmem_limit):
    """Largest 128-aligned tile such that the streamed buffers
    (2 inputs x 2 pipeline buffers x tile_n x n_h x itemsize) fit the budget."""
    stream_budget = max(vmem_limit - 8 * _MIB, 8 * _MIB)   # headroom: out bufs, wc
    per_row = 4 * n_h * itemsize
    tile_n = max(128, min(4096, _round_down(stream_budget // per_row, 128)))
    if N <= tile_n:
        # Single block: either the whole array (allowed as a full-dim block)
        # or one 128-aligned ragged block.
        return N if N <= 128 else min(tile_n, _round_up(N, 128))
    return tile_n


# ----------------------------------------------------------------------------
# Wrapper
# ----------------------------------------------------------------------------
def discriminator_forward(c, h_pl, h_mi, w, b, s_bias1=None, s_bias2=None,
                          *, tile_n=None):
    """c: (1, n_h), h_pl/h_mi: (N, n_h), w: (n_h, n_h), b: (1,)  ->  (N, 2)."""
    N, n_h = h_pl.shape
    assert h_mi.shape == (N, n_h) and c.shape == (1, n_h) and w.shape == (n_h, n_h)

    # Collapse the bilinear form once (nn.Bilinear(n_h, n_h, 1) semantics):
    #   sc[n] = h[n, :] . (W @ c) + b
    # so the kernel never touches the (n_h, n_h) weight.
    wc = jnp.dot(c.astype(jnp.float32), w.astype(jnp.float32).T,
                 precision=lax.Precision.HIGHEST)          # (1, n_h)
    b = jnp.asarray(b, jnp.float32).reshape((1,))

    vmem_limit = _vmem_limit_bytes()
    if tile_n is None:
        tile_n = _derive_tile_n(N, n_h, h_pl.dtype.itemsize, vmem_limit)

    out = pl.pallas_call(
        _discriminator_kernel,
        out_shape=jax.ShapeDtypeStruct((2, N), jnp.float32),
        grid=(pl.cdiv(N, tile_n),),                         # ragged last block OK
        in_specs=[
            pl.BlockSpec((1, n_h), lambda i: (0, 0)),            # wc (resident)
            pl.BlockSpec(memory_space=pltpu.MemorySpace.SMEM),   # bias scalar
            pl.BlockSpec((tile_n, n_h), lambda i: (i, 0)),       # h_pl tile
            pl.BlockSpec((tile_n, n_h), lambda i: (i, 0)),       # h_mi tile
        ],
        out_specs=pl.BlockSpec((2, tile_n), lambda i: (0, i)),   # lane-dense
        compiler_params=pltpu.CompilerParams(
            dimension_semantics=("parallel",),     # megacore / v7x 2-TC split
            vmem_limit_bytes=vmem_limit,
        ),
    )(wc, b, h_pl, h_mi)

    sc1 = out[0, :][:, None]          # (N, 1)
    sc2 = out[1, :][:, None]          # (N, 1)
    if s_bias1 is not None:
        sc1 = sc1 + s_bias1
    if s_bias2 is not None:
        sc2 = sc2 + s_bias2
    return jnp.concatenate([sc1, sc2], axis=1)               # (N, 2)


# ----------------------------------------------------------------------------
# Params / reference
# ----------------------------------------------------------------------------
def init_params(n_h, key):
    """Deterministic init matching nn.Bilinear(n_h, n_h, 1) + xavier_uniform_."""
    fan_in = n_h * n_h            # PyTorch bilinear weight shape: (1, n_h, n_h)
    fan_out = 1 * n_h
    bound = math.sqrt(6.0 / (fan_in + fan_out))
    w = jax.random.uniform(key, (n_h, n_h), jnp.float32, -bound, bound)
    b = jnp.zeros((1,), jnp.float32)   # bias.data.fill_(0.0)
    return w, b


def reference_forward(c, h_pl, h_mi, w, b):
    """Plain-JAX reference of the PyTorch bilinear semantics."""
    c_x = jnp.broadcast_to(c, h_pl.shape)
    sc1 = jnp.sum((h_pl @ w) * c_x, axis=-1, keepdims=True) + b[0]
    sc2 = jnp.sum((h_mi @ w) * c_x, axis=-1, keepdims=True) + b[0]
    return jnp.concatenate([sc1, sc2], axis=1)


# ----------------------------------------------------------------------------
# Demo / correctness checks
# ----------------------------------------------------------------------------
if __name__ == "__main__":
    key = jax.random.PRNGKey(0)
    k_w, k_c, k_pl, k_mi = jax.random.split(key, 4)

    n_h = 32
    w, b = init_params(n_h, k_w)
    c = jax.random.normal(k_c, (1, n_h), jnp.float32)       # summary vector

    # Case 1: small N, single full block (auto-derived tile_n).
    N = 16
    h_pl = jax.random.normal(k_pl, (N, n_h), jnp.float32)   # positive embeddings
    h_mi = jax.random.normal(k_mi, (N, n_h), jnp.float32)   # negative embeddings
    logits = jax.block_until_ready(discriminator_forward(c, h_pl, h_mi, w, b))
    ref = reference_forward(c, h_pl, h_mi, w, b)
    assert logits.shape == (N, 2)
    assert jnp.allclose(logits, ref, atol=2e-4, rtol=2e-4)

    # Case 2: ragged multi-block grid (N % tile_n != 0, no padding copy).
    # Confirms that garbage in the OOB rows of the last streamed h tile never
    # leaks into the kept [:N] rows (OOB output lanes are masked on writeback).
    N2 = 300
    k_pl2, k_mi2 = jax.random.split(k_pl)
    h_pl2 = jax.random.normal(k_pl2, (N2, n_h), jnp.float32)
    h_mi2 = jax.random.normal(k_mi2, (N2, n_h), jnp.float32)
    logits2 = jax.block_until_ready(
        discriminator_forward(c, h_pl2, h_mi2, w, b, tile_n=128))
    ref2 = reference_forward(c, h_pl2, h_mi2, w, b)
    assert logits2.shape == (N2, 2)
    assert jnp.allclose(logits2, ref2, atol=2e-4, rtol=2e-4)

    print("KERNEL_OK")
</pallas_src>

<mosaic_0001>
module attributes {stable_mosaic.version = 11 : i64} {
  func.func @_discriminator_kernel(%arg0: i32, %arg1: memref<1x32xf32, #tpu.memory_space<vmem>>, %arg2: memref<1xf32, #tpu.memory_space<smem>>, %arg3: memref<16x32xf32, #tpu.memory_space<vmem>>, %arg4: memref<16x32xf32, #tpu.memory_space<vmem>>, %arg5: memref<2x16xf32, #tpu.memory_space<vmem>>) attributes {dimension_semantics = [#tpu.dimension_semantics<parallel>], iteration_bounds = array<i64: 1>, scalar_prefetch = 0 : i64, scratch_operands = 0 : i64, tpu.core_type = #tpu.core_type<tc>, window_params = [{pipeline_mode = #tpu.pipeline_mode<synchronous>, transform_indices = @transform_0, window_bounds = array<i64: 1, 32>}, {transform_indices = @transform_1, window_bounds = array<i64: 1>}, {transform_indices = @transform_2, window_bounds = array<i64: 16, 32>}, {transform_indices = @transform_3, window_bounds = array<i64: 16, 32>}, {transform_indices = @transform_4, window_bounds = array<i64: 2, 16>}]} {
    %c0 = arith.constant 0 : index
    %0 = memref.load %arg2[%c0] : memref<1xf32, #tpu.memory_space<smem>>
    %c0_0 = arith.constant 0 : index
    %c0_1 = arith.constant 0 : index
    %1 = vector.load %arg1[%c0_0, %c0_1] : memref<1x32xf32, #tpu.memory_space<vmem>>, vector<1x32xf32>
    %c0_2 = arith.constant 0 : index
    %c0_3 = arith.constant 0 : index
    %2 = vector.load %arg3[%c0_2, %c0_3] : memref<16x32xf32, #tpu.memory_space<vmem>>, vector<16x32xf32>
    %cst = arith.constant dense<0.000000e+00> : vector<1x16xf32>
    %3 = tpu.matmul %1, %2, %cst {dimension_numbers = #tpu.dot_dimension_numbers<[1], [1], [0], [0], [0, 0, 1, 0], [], []>} : vector<1x32xf32>, vector<16x32xf32>, vector<1x16xf32> -> vector<1x16xf32>
    %c0_4 = arith.constant 0 : index
    %c0_5 = arith.constant 0 : index
    %4 = vector.load %arg4[%c0_4, %c0_5] : memref<16x32xf32, #tpu.memory_space<vmem>>, vector<16x32xf32>
    %cst_6 = arith.constant dense<0.000000e+00> : vector<1x16xf32>
    %5 = tpu.matmul %1, %4, %cst_6 {dimension_numbers = #tpu.dot_dimension_numbers<[1], [1], [0], [0], [0, 0, 1, 0], [], []>} : vector<1x32xf32>, vector<16x32xf32>, vector<1x16xf32> -> vector<1x16xf32>
    %6 = vector.broadcast %0 : f32 to vector<1x16xf32>
    %7 = arith.addf %3, %6 : vector<1x16xf32>
    %c0_7 = arith.constant 0 : index
    %c0_8 = arith.constant 0 : index
    %8 = vector.load %arg5[%c0_7, %c0_8] : memref<2x16xf32, #tpu.memory_space<vmem>>, vector<1x16xf32>
    tpu.vector_store %arg5[%c0_7, %c0_8], %7 {strides = array<i32>} : memref<2x16xf32, #tpu.memory_space<vmem>>, vector<1x16xf32>,
    %9 = vector.broadcast %0 : f32 to vector<1x16xf32>
    %10 = arith.addf %5, %9 : vector<1x16xf32>
    %c1 = arith.constant 1 : index
    %c0_9 = arith.constant 0 : index
    %11 = vector.load %arg5[%c1, %c0_9] : memref<2x16xf32, #tpu.memory_space<vmem>>, vector<1x16xf32>
    tpu.vector_store %arg5[%c1, %c0_9], %10 {strides = array<i32>} : memref<2x16xf32, #tpu.memory_space<vmem>>, vector<1x16xf32>,
    return
  }
  func.func @transform_0(%arg0: i32) -> (i32, i32) {
    %c0_i32 = arith.constant 0 : i32
    %c0_i32_0 = arith.constant 0 : i32
    %c0_i32_1 = arith.constant 0 : i32
    return %c0_i32, %c0_i32_0 : i32, i32
  }
  func.func @transform_1(%arg0: i32) -> i32 {
    %c0_i32 = arith.constant 0 : i32
    %c0_i32_0 = arith.constant 0 : i32
    return %c0_i32 : i32
  }
  func.func @transform_2(%arg0: i32) -> (i32, i32) {
    %c0_i32 = arith.constant 0 : i32
    %c0_i32_0 = arith.constant 0 : i32
    return %arg0, %c0_i32 : i32, i32
  }
  func.func @transform_3(%arg0: i32) -> (i32, i32) {
    %c0_i32 = arith.constant 0 : i32
    %c0_i32_0 = arith.constant 0 : i32
    return %arg0, %c0_i32 : i32, i32
  }
  func.func @transform_4(%arg0: i32) -> (i32, i32) {
    %c0_i32 = arith.constant 0 : i32
    %c0_i32_0 = arith.constant 0 : i32
    return %c0_i32, %arg0 : i32, i32
  }
}

</mosaic_0001>

<bundles_post_ra>
// kernel: tpu_custom_call.1
= control target key start
LH: loop header
LB: loop body
LE: loop exit
PB: predicated region body
PF: predicated region fallthrough
CT: control target
= control target key end

     0   :  { %10 = vsyncpa [#allocation4], 0  ;;  %s418_s0 = inlined_call_operand.vmem [shape: f32[1,32], index: 0, kind: input, shape index: {}]   ;;  %s419_s1 = inlined_call_operand.<no memory space> [shape: f32[1], index: 1, kind: input, shape index: {}]   ;;  %s420_s2 = inlined_call_operand.hbm [shape: f32[16,32], index: 2, kind: input, shape index: {}]   ;;  %s421_s3 = inlined_call_operand.hbm [shape: f32[16,32], index: 3, kind: input, shape index: {}]   ;;  %s422_s4 = inlined_call_operand.hbm [shape: f32[2,16], index: 4, kind: output, shape index: {}]  }
   0x1   :  { %11 = vsyncpa [#allocation7], 0 }
   0x2   :  { %12 = vsyncpa [#allocation5], 0  ;;  %s343_s15 = smov [#allocation3]   ;;  %s271_s19 = scalar_lea.hbm %s420_s2, 256 }
   0x3   :  { %s22_s16 = sshll.u32 %s343_s15, 4  ;;  %p272_p0 = scmp.ne.s32.totalorder %s420_s2, %s271_s19  ;;  %s23_s16 = int_to_ptr.vmem [resolvable:$true] %s22_s16 }
   0x4   :  { %p275_p1 = scmp.lt.u32.totalorder %s271_s19, %s420_s2 }
   0x6   :  { %p277_p2 = pnand %p275_p1, %p272_p0 }
   0x8   :  { %280 = shalt.err (!%p277_p2)
}
   0x9   :  { %s281_s24 = scalar_lea.vmem %s23_s16, 256  ;;  %p286_p4 = scmp.lt.s32.totalorder %s23_s16, %s23_s16 }
   0xa   :  { %p282_p3 = scmp.ne.s32.totalorder %s23_s16, %s281_s24  ;;  %p287_p5 = scmp.lt.s32.totalorder %s281_s24, %s281_s24 }
   0xc   :  { %p288_p6 = por %p287_p5, %p286_p4 }
   0xe   :  { %p289_p7 = pnand %p288_p6, %p282_p3 }
  0x10   :  { %292 = shalt.err (!%p289_p7)
}
  0x11   :  { %s344_s25 = smov 128   ;;  %s345_s26 = smov 8  }
  0x12   :  { %28 = dma.hbm_to_vmem [thread:$0]  %s420_s2, 256, %s23_s16, [#allocation4], %s344_s25, %s344_s25, %s345_s26  }
  0x13   :  { %s346_s29 = smov [#allocation6]   ;;  %s293_s7 = scalar_lea.hbm %s421_s3, 256 }
  0x14   :  { %s34_s30 = sshll.u32 %s346_s29, 4  ;;  %p294_p8 = scmp.ne.s32.totalorder %s421_s3, %s293_s7  ;;  %s35_s30 = int_to_ptr.vmem [resolvable:$true] %s34_s30 }
  0x15   :  { %p297_p9 = scmp.lt.u32.totalorder %s293_s7, %s421_s3 }
  0x17   :  { %p299_p10 = pnand %p297_p9, %p294_p8 }
  0x19   :  { %302 = shalt.err (!%p299_p10)
}
  0x1a   :  { %s303_s12 = scalar_lea.vmem %s35_s30, 256  ;;  %p308_p12 = scmp.lt.s32.totalorder %s35_s30, %s35_s30 }
  0x1b   :  { %p304_p11 = scmp.ne.s32.totalorder %s35_s30, %s303_s12  ;;  %p309_p13 = scmp.lt.s32.totalorder %s303_s12, %s303_s12 }
  0x1d   :  { %p310_p0 = por %p309_p13, %p308_p12 }
  0x1f   :  { %p311_p1 = pnand %p310_p0, %p304_p11 }
  0x21   :  { %314 = shalt.err (!%p311_p1)
}
  0x22   :  { %40 = dma.hbm_to_vmem [thread:$0]  %s421_s3, 256, %s35_s30, [#allocation7], %s344_s25, %s344_s25, %s345_s26  }
  0x23   :  { %337 = dma.done.wait [#allocation4], 256  }
  0x24   :  { %338 = vsyncadd [#allocation4], 4294967040 }
  0x25   :  { %339 = dma.done.wait [#allocation7], 256  }
  0x26   :  { %340 = vsyncadd [#allocation7], 4294967040  ;;  %v347_v0 = vmov 0.0|0.0   ;;  %vm348_vm0 = vmmov 0   ;;  %v349_v1 = vmov 0.0   ;;  %vm54_vm1 = vcmask 261120  }
  0x27   :  { %255 = vmatprep.subr.bf16.mxu0 %v347_v0  ;;  %259 = vmatprep.subr.bf16.mxu1 %v347_v0  ;;  %vm257_vm2 = vmpackc.low %vm54_vm1, %vm54_vm1  ;;  %v49_v2 = vld [vmem:[#allocation3] sm:$0xff]  ;;  %v50_v3 = vld [vmem:[#allocation3 + $0x8] sm:$0xff]  ;;  %v53_v9 = vstv %s419_s1  ;;  %s350_s17 = smov [#allocation8]   ;;  %vm134_vm3 = vcmask 122880  }
  0x28   :  { %245 = vmatprep.mubr.msk.f32.mxu0 %vm348_vm0, %v349_v1  ;;  %252 = vmatprep.mubr.msk.f32.mxu1 %vm348_vm0, %v349_v1  ;;  %v51_v4 = vld [vmem:[#allocation6] sm:$0xff]  ;;  %v256_v5 = vpack.c.bf16 %v50_v3, %v49_v2  ;;  %v52_v6 = vld [vmem:[#allocation6 + $0x8] sm:$0xff]  ;;  %v48_v8 = vld [vmem:[%s418_s0] sm:$0x1]  ;;  %s219_s18 = sshll.u32 %s350_s17, 4  ;;  %s220_s18 = int_to_ptr.vmem [resolvable:$true] %s219_s18 }
  0x29   :  { %v260_v7 = vpack.c.bf16 %v52_v6, %v51_v4  ;;  %s315_s19 = scalar_lea.vmem %s220_s18, 32  ;;  %p320_p3 = scmp.lt.s32.totalorder %s220_s18, %s220_s18 }
  0x2a   :  { %258 = vmatpush3.bf16.xpose.msk.msra.mxu0 %vm257_vm2, %v256_v5  ;;  %p316_p2 = scmp.ne.s32.totalorder %s220_s18, %s315_s19  ;;  %p321_p4 = scmp.lt.s32.totalorder %s315_s19, %s315_s19 }
  0x2b   :  { %262 = vmatpush3.bf16.xpose.msk.msra.mxu1 %vm257_vm2, %v260_v7 }
  0x2c   :  { %p322_p5 = por %p321_p4, %p320_p3 }
  0x2e   :  { %p323_p6 = pnand %p322_p5, %p316_p2 }
  0x31   :  { %246 = vmatmul.mubr.msk.f32.vlgmr.msra.gmra.mrb[0].mxu0 %vm54_vm1, %v48_v8 }
  0x32   :  { %253 = vmatmul.mubr.msk.f32.vlgmr.msra.gmra.mrb[0].mxu1 %vm54_vm1, %v48_v8 }
 0x104   :  { %v130_v10 = vpop.f32.mrb[0].mxu0 }
 0x105   :  { %v131_v11 = vadd.f32 %v130_v10, %v53_v9  ;;  %v208_v12 = vpop.f32.mrb[0].mxu1  ;;  %v247_v13 = vpop.f32.mrb[1].mxu0 }
 0x106   :  { %v209_v14 = vadd.f32 %v208_v12, %v53_v9  ;;  %v254_v15 = vpop.f32.mrb[1].mxu1 }
 0x107   :  { %135 = vst.msk [vmem:[#allocation8] sm:$0x1] %vm134_vm3, %v131_v11 }
 0x108   :  { %212 = vst.msk [vmem:[#allocation8 + $0x1] sm:$0x1] %vm134_vm3, %v209_v14 }
 0x109   :  { %326 = shalt.err (!%p323_p6)
}
 0x10a   :  { %s327_s20 = scalar_lea.hbm %s422_s4, 32 }
 0x10b   :  { %p328_p7 = scmp.ne.s32.totalorder %s422_s4, %s327_s20  ;;  %p331_p8 = scmp.lt.u32.totalorder %s327_s20, %s422_s4 }
 0x10d   :  { %p333_p9 = pnand %p331_p8, %p328_p7 }
 0x10f   :  { %336 = shalt.err (!%p333_p9)
}
 0x110   :  { %222 = dma.vmem_to_hbm [thread:$0]  %s220_s18, 32, %s422_s4, [#allocation5]  }
 0x111   :  { %341 = dma.done.wait [#allocation5], 32  }
 0x112   :  { %342 = vsyncadd [#allocation5], 4294967264 }
 0x113   :  { %226 = vsyncpa [#allocation4], 1 }
 0x114   :  { %227 = vsyncpa [#allocation7], 1 }
 0x115   :  { %228 = vsyncpa [#allocation5], 1 }

</bundles_post_ra>
